<compile_context>
chip_gen: v5e
topology: v5e:2x2
jax: 0.10.0
libtpu: 0.0.40
codegen_flags: <defaults>
</compile_context>

<pallas_src>
import jax
import jax.numpy as jnp
from jax.experimental import pallas as pl
from jax.experimental.pallas import tpu as pltpu


def _contrastive_kernel(zt_ref, w1t_ref, b1_ref, w2_ref, b2_ref, out_ref):
    # Layer 1 (fused K = 2L dot, batch on lanes): h = tanh(W1^T @ zcat^T + b1)   -> (H, TB)
    h = jnp.tanh(
        jnp.dot(w1t_ref[...], zt_ref[...], preferred_element_type=jnp.float32)
        + b1_ref[...]                                           # (H, 1) broadcasts over lanes
    )
    # Layer 2 (H -> 1): VPU multiply + cross-sublane (XLU) reduce; keeps batch on lanes,
    # avoids an N=1 MXU matmul.
    logits = jnp.sum(h * w2_ref[...], axis=0, keepdims=True) + b2_ref[0, 0]      # (1, TB)
    out_ref[...] = jax.nn.sigmoid(logits).astype(out_ref.dtype)


def _round_up(x, m):
    return ((x + m - 1) // m) * m


# Batch tile (lanes per grid step).  32768 rows -> ~1 MiB of streamed input + ~8 MiB of transient
# f32 intermediates per step: amortizes the ~0.35 us per-step overhead on v5e/v6e while staying
# well under the v7x 64 MiB per-TC VMEM budget.
_TB_DEFAULT = 32768


def contrastive_net(z0, z1, params, tb=_TB_DEFAULT):
    """Forward pass of ContrastiveNet (n_hidden_layers=1).

    z0, z1: (B, n_latent_dims) float32
    params: dict with w1 (2L, H), b1 (1, H), w2 (H, 1), b2 (1, 1)
    returns: (B,) float32  (matches torch .squeeze() on a (B, 1) output)
    """
    B, L = z0.shape
    H = params["w1"].shape[1]
    K = 2 * L

    # Single relayout to feature-major: (B, 2L) concat -> (2L, B).  One HBM pass, and it enables
    # the fused K=2L dot inside the kernel.
    zt = jnp.concatenate([z0, z1], axis=1).T    # (2L, B)

    w1t = params["w1"].T                        # (H, 2L)
    b1 = params["b1"].reshape(H, 1)             # (H, 1)
    w2 = params["w2"].reshape(H, 1)             # (H, 1)
    b2 = params["b2"].reshape(1, 1)             # (1, 1)  scalar -> SMEM

    # Lane-aligned tile; no padding — Pallas masks the partial boundary block.
    TB = min(tb, _round_up(B, 128))
    grid = (pl.cdiv(B, TB),)

    out = pl.pallas_call(
        _contrastive_kernel,
        out_shape=jax.ShapeDtypeStruct((1, B), jnp.float32),
        grid=grid,
        in_specs=[
            pl.BlockSpec((K, TB), lambda i: (0, i)),                 # zcat^T (batch-tiled)
            pl.BlockSpec((H, K), lambda i: (0, 0)),                  # W1^T   (resident)
            pl.BlockSpec((H, 1), lambda i: (0, 0)),                  # b1     (resident)
            pl.BlockSpec((H, 1), lambda i: (0, 0)),                  # w2     (resident)
            pl.BlockSpec((1, 1), lambda i: (0, 0),
                         memory_space=pltpu.MemorySpace.SMEM),       # b2 scalar in SMEM
        ],
        out_specs=pl.BlockSpec((1, TB), lambda i: (0, i)),           # lane-dense output
        compiler_params=pltpu.CompilerParams(
            dimension_semantics=("parallel",),                       # shard batch tiles across TCs
            vmem_limit_bytes=48 * 1024 * 1024,                       # safe on v5e/v6e (128 MiB) and v7x (64 MiB)
        ),
    )(zt, w1t, b1, w2, b2)

    # torch .squeeze() on (B, 1) -> (B,); also drops any masked tail lanes.
    return out[0, :B]


def init_params(key, n_latent_dims=4, n_units_per_layer=32):
    """Deterministic init mimicking torch.nn.Linear's U(-1/sqrt(fan_in), 1/sqrt(fan_in))."""
    k1, k2, k3, k4 = jax.random.split(key, 4)
    fan_in1 = 2 * n_latent_dims
    fan_in2 = n_units_per_layer
    lim1 = 1.0 / jnp.sqrt(fan_in1)
    lim2 = 1.0 / jnp.sqrt(fan_in2)
    return {
        "w1": jax.random.uniform(k1, (fan_in1, n_units_per_layer), jnp.float32, -lim1, lim1),
        "b1": jax.random.uniform(k2, (1, n_units_per_layer), jnp.float32, -lim1, lim1),
        "w2": jax.random.uniform(k3, (fan_in2, 1), jnp.float32, -lim2, lim2),
        "b2": jax.random.uniform(k4, (1, 1), jnp.float32, -lim2, lim2),
    }


def _reference(z0, z1, params):
    ctx = jnp.concatenate([z0, z1], axis=-1)
    h = jnp.tanh(ctx @ params["w1"] + params["b1"])
    return jax.nn.sigmoid(h @ params["w2"] + params["b2"]).squeeze()


if __name__ == "__main__":
    key = jax.random.PRNGKey(0)
    kp, kz0, kz1, kz2, kz3 = jax.random.split(key, 5)

    n_latent_dims = 4
    n_units_per_layer = 32
    params = init_params(kp, n_latent_dims, n_units_per_layer)

    # Small single-tile case (B=8, padded up to a 128-lane block via masking).
    batch = 8
    z0 = jax.random.normal(kz0, (batch, n_latent_dims), jnp.float32)
    z1 = jax.random.normal(kz1, (batch, n_latent_dims), jnp.float32)
    fakes = jax.block_until_ready(contrastive_net(z0, z1, params))
    ref = _reference(z0, z1, params)
    assert fakes.shape == (batch,)
    assert jnp.allclose(fakes, ref, atol=1e-5), (fakes, ref)

    # Non-aligned multi-tile case (B=300, tb=128 -> 3 grid steps, masked partial last block).
    batch2 = 300
    z0b = jax.random.normal(kz2, (batch2, n_latent_dims), jnp.float32)
    z1b = jax.random.normal(kz3, (batch2, n_latent_dims), jnp.float32)
    fakes2 = jax.block_until_ready(contrastive_net(z0b, z1b, params, tb=128))
    ref2 = _reference(z0b, z1b, params)
    assert fakes2.shape == (batch2,)
    assert jnp.allclose(fakes2, ref2, atol=1e-5)

    print("KERNEL_OK")
</pallas_src>

<mosaic_0001>
module attributes {stable_mosaic.version = 11 : i64} {
  func.func @_contrastive_kernel(%arg0: i32, %arg1: memref<8x128xf32, #tpu.memory_space<vmem>>, %arg2: memref<32x8xf32, #tpu.memory_space<vmem>>, %arg3: memref<32x1xf32, #tpu.memory_space<vmem>>, %arg4: memref<32x1xf32, #tpu.memory_space<vmem>>, %arg5: memref<1x1xf32, #tpu.memory_space<smem>>, %arg6: memref<1x128xf32, #tpu.memory_space<vmem>>) attributes {dimension_semantics = [#tpu.dimension_semantics<parallel>], iteration_bounds = array<i64: 1>, scalar_prefetch = 0 : i64, scratch_operands = 0 : i64, tpu.core_type = #tpu.core_type<tc>, window_params = [{transform_indices = @transform_0, window_bounds = array<i64: 8, 128>}, {pipeline_mode = #tpu.pipeline_mode<synchronous>, transform_indices = @transform_1, window_bounds = array<i64: 32, 8>}, {pipeline_mode = #tpu.pipeline_mode<synchronous>, transform_indices = @transform_2, window_bounds = array<i64: 32, 1>}, {pipeline_mode = #tpu.pipeline_mode<synchronous>, transform_indices = @transform_3, window_bounds = array<i64: 32, 1>}, {transform_indices = @transform_4, window_bounds = array<i64: 1, 1>}, {transform_indices = @transform_5, window_bounds = array<i64: 1, 128>}]} {
    %c0 = arith.constant 0 : index
    %c0_0 = arith.constant 0 : index
    %0 = vector.load %arg2[%c0, %c0_0] : memref<32x8xf32, #tpu.memory_space<vmem>>, vector<32x8xf32>
    %c0_1 = arith.constant 0 : index
    %c0_2 = arith.constant 0 : index
    %1 = vector.load %arg1[%c0_1, %c0_2] : memref<8x128xf32, #tpu.memory_space<vmem>>, vector<8x128xf32>
    %cst = arith.constant dense<0.000000e+00> : vector<32x128xf32>
    %2 = tpu.matmul %0, %1, %cst {dimension_numbers = #tpu.dot_dimension_numbers<[1], [0], [0], [1], [0, 0, 1, 1], [], []>} : vector<32x8xf32>, vector<8x128xf32>, vector<32x128xf32> -> vector<32x128xf32>
    %c0_3 = arith.constant 0 : index
    %c0_4 = arith.constant 0 : index
    %3 = vector.load %arg3[%c0_3, %c0_4] : memref<32x1xf32, #tpu.memory_space<vmem>>, vector<32x1xf32>
    %4 = vector.broadcast %3 : vector<32x1xf32> to vector<32x128xf32>
    %5 = arith.addf %2, %4 : vector<32x128xf32>
    %6 = math.tanh %5 : vector<32x128xf32>
    %c0_5 = arith.constant 0 : index
    %c0_6 = arith.constant 0 : index
    %7 = vector.load %arg4[%c0_5, %c0_6] : memref<32x1xf32, #tpu.memory_space<vmem>>, vector<32x1xf32>
    %8 = vector.broadcast %7 : vector<32x1xf32> to vector<32x128xf32>
    %9 = arith.mulf %6, %8 : vector<32x128xf32>
    %cst_7 = arith.constant dense<0.000000e+00> : vector<128xf32>
    %10 = vector.multi_reduction <add>, %9, %cst_7 [0] : vector<32x128xf32> to vector<128xf32>
    %11 = vector.shape_cast %10 : vector<128xf32> to vector<1x128xf32>
    %c0_8 = arith.constant 0 : index
    %c0_9 = arith.constant 0 : index
    %12 = memref.load %arg5[%c0_8, %c0_9] : memref<1x1xf32, #tpu.memory_space<smem>>
    %13 = vector.broadcast %12 : f32 to vector<1x128xf32>
    %14 = arith.addf %11, %13 : vector<1x128xf32>
    %15 = arith.negf %14 : vector<1x128xf32>
    %16 = math.exp %15 : vector<1x128xf32>
    %cst_10 = arith.constant 1.000000e+00 : f32
    %17 = vector.broadcast %cst_10 : f32 to vector<1x128xf32>
    %18 = arith.addf %17, %16 : vector<1x128xf32>
    %19 = arith.divf %17, %18 : vector<1x128xf32>
    %c0_11 = arith.constant 0 : index
    %c0_12 = arith.constant 0 : index
    %20 = vector.load %arg6[%c0_11, %c0_12] : memref<1x128xf32, #tpu.memory_space<vmem>>, vector<1x128xf32>
    tpu.vector_store %arg6[%c0_11, %c0_12], %19 {strides = array<i32>} : memref<1x128xf32, #tpu.memory_space<vmem>>, vector<1x128xf32>,
    return
  }
  func.func @transform_0(%arg0: i32) -> (i32, i32) {
    %c0_i32 = arith.constant 0 : i32
    %c0_i32_0 = arith.constant 0 : i32
    return %c0_i32, %arg0 : i32, i32
  }
  func.func @transform_1(%arg0: i32) -> (i32, i32) {
    %c0_i32 = arith.constant 0 : i32
    %c0_i32_0 = arith.constant 0 : i32
    %c0_i32_1 = arith.constant 0 : i32
    return %c0_i32, %c0_i32_0 : i32, i32
  }
  func.func @transform_2(%arg0: i32) -> (i32, i32) {
    %c0_i32 = arith.constant 0 : i32
    %c0_i32_0 = arith.constant 0 : i32
    %c0_i32_1 = arith.constant 0 : i32
    return %c0_i32, %c0_i32_0 : i32, i32
  }
  func.func @transform_3(%arg0: i32) -> (i32, i32) {
    %c0_i32 = arith.constant 0 : i32
    %c0_i32_0 = arith.constant 0 : i32
    %c0_i32_1 = arith.constant 0 : i32
    return %c0_i32, %c0_i32_0 : i32, i32
  }
  func.func @transform_4(%arg0: i32) -> (i32, i32) {
    %c0_i32 = arith.constant 0 : i32
    %c0_i32_0 = arith.constant 0 : i32
    %c0_i32_1 = arith.constant 0 : i32
    return %c0_i32, %c0_i32_0 : i32, i32
  }
  func.func @transform_5(%arg0: i32) -> (i32, i32) {
    %c0_i32 = arith.constant 0 : i32
    %c0_i32_0 = arith.constant 0 : i32
    return %c0_i32, %arg0 : i32, i32
  }
}

</mosaic_0001>

<bundles_post_ra>
// kernel: tpu_custom_call.1
= control target key start
LH: loop header
LB: loop body
LE: loop exit
PB: predicated region body
PF: predicated region fallthrough
CT: control target
= control target key end

     0   :  { %v224_v1 = vmov 0   ;;  %vm51_vm0 = vcmask 64512   ;;  %s301_s0 = inlined_call_operand.vmem [shape: f32[8,8], index: 0, kind: input, shape index: {}]   ;;  %s302_s1 = inlined_call_operand.vmem [shape: f32[32,8], index: 1, kind: input, shape index: {}]   ;;  %s303_s2 = inlined_call_operand.vmem [shape: f32[32,1], index: 2, kind: input, shape index: {}]   ;;  %s304_s3 = inlined_call_operand.vmem [shape: f32[32,1], index: 3, kind: input, shape index: {}]   ;;  %s305_s4 = inlined_call_operand.<no memory space> [shape: f32[1,1], index: 4, kind: input, shape index: {}]   ;;  %s306_s5 = inlined_call_operand.hbm [shape: f32[1,8], index: 5, kind: output, shape index: {}]  }
   0x1   :  { %v26_v0 = vld [vmem:[%s301_s0] sm:$0xff]  ;;  %184 = vset.pattern.permute.xlu1 %v224_v1  ;;  %183 = vset.pattern.permute.xlu0 %v224_v1  ;;  %v29_v2 = vld [vmem:[%s303_s2 + $0x10] sm:$0xff]  ;;  %v23_v5 = vld [vmem:[%s302_s1 + $0x8] sm:$0xff] }
   0x2   :  { %v27_v3 = vld [vmem:[%s303_s2] sm:$0xff]  ;;  %79 = vmatpush.msra.mxu0 %v26_v0  ;;  %178 = vmatpush.msra.mxu1 %v26_v0  ;;  %v24_v6 = vld [vmem:[%s302_s1 + $0x10] sm:$0xff]  ;;  %v25_v7 = vld [vmem:[%s302_s1 + $0x18] sm:$0xff] }
   0x3   :  { %v22_v4 = vld [vmem:[%s302_s1] sm:$0xff]  ;;  %179 = vmatpush.msra.mxu2 %v26_v0  ;;  %180 = vmatpush.msra.mxu3 %v26_v0 }
   0x4   :  { %43 = vperm.xlu1 %184, %v29_v2   ;;  %33 = vperm.xlu0 %183, %v27_v3  }
   0x5   :  { %11 = vsyncpa [#allocation4], 0  ;;  %173 = vmatmul.msk.f32.vlgmr.msra.gmra.mxu0 %vm51_vm0, %v22_v4  ;;  %174 = vmatmul.msk.f32.vlgmr.msra.gmra.mxu1 %vm51_vm0, %v23_v5  ;;  %v97_v8 = vld [vmem:[%s304_s3] sm:$0xff]  ;;  %v30_v9 = vld [vmem:[%s303_s2 + $0x18] sm:$0xff]  ;;  %v135_v46 = vstv %s305_s4  ;;  %s225_s17 = smov [#allocation3]   ;;  %s164_s4 = sshll.u32 %s306_s5, 4  ;;  %s165_s4 = int_to_ptr.hbm [resolvable:$true] %s164_s4 }
   0x6   :  { %175 = vmatmul.msk.f32.vlgmr.msra.gmra.mxu2 %vm51_vm0, %v24_v6  ;;  %176 = vmatmul.msk.f32.vlgmr.msra.gmra.mxu3 %vm51_vm0, %v25_v7  ;;  %v28_v10 = vld [vmem:[%s303_s2 + $0x8] sm:$0xff]  ;;  %v100_v12 = vld [vmem:[%s304_s3 + $0x18] sm:$0xff]  ;;  %v99_v13 = vld [vmem:[%s304_s3 + $0x10] sm:$0xff]  ;;  %s162_s18 = sshll.u32 %s225_s17, 4  ;;  %s163_s18 = int_to_ptr.vmem [resolvable:$true] %s162_s18 }
   0x7   :  { %185 = vset.pattern.permute.xlu2 %v224_v1  ;;  %v98_v11 = vld [vmem:[%s304_s3 + $0x8] sm:$0xff] }
   0x8   :  { %103 = vperm.xlu2 %185, %v97_v8  }
   0xc   :  { %48 = vperm.xlu1 %184, %v30_v9   ;;  %38 = vperm.xlu0 %183, %v28_v10  }
  0x10   :  { %108 = vperm.xlu2 %185, %v98_v11  }
  0x14   :  { %118 = vperm.xlu1 %184, %v100_v12   ;;  %113 = vperm.xlu0 %183, %v99_v13  }
  0x62   :  { %v104_v21 = vpop.permute.xlu2 %103 }
  0x6a   :  { %v109_v29 = vpop.permute.xlu2 %108 }
  0x76   :  { %v34_v14 = vpop.permute.xlu0 %33  ;;  %v44_v15 = vpop.permute.xlu1 %43 }
  0x7e   :  { %v39_v16 = vpop.permute.xlu0 %38  ;;  %v49_v22 = vpop.permute.xlu1 %48 }
  0x82   :  { %v81_v17 = vpop.f32.mrf.mxu0  ;;  %v84_v18 = vpop.f32.mrf.mxu1 }
  0x83   :  { %v82_v19 = vadd.f32 %v81_v17, %v34_v14  ;;  %v85_v20 = vadd.f32 %v84_v18, %v39_v16 }
  0x85   :  { %186 = vtanh.f32 %v82_v19 }
  0x86   :  { %188 = vtanh.f32 %v85_v20  ;;  %v114_v33 = vpop.permute.xlu0 %113  ;;  %v119_v37 = vpop.permute.xlu1 %118 }
  0x89   :  { %v87_v23 = vpop.f32.mrf.mxu2  ;;  %v90_v24 = vpop.f32.mrf.mxu3 }
  0x8a   :  { %v88_v25 = vadd.f32 %v87_v23, %v44_v15  ;;  %v91_v26 = vadd.f32 %v90_v24, %v49_v22 }
  0x8b   :  { %v187_v27 = vpop.eup %186 }
  0x8c   :  { %v189_v28 = vpop.eup %188  ;;  %190 = vtanh.f32 %v88_v25  ;;  %v121_v30 = vmul.f32 %v187_v27, %v104_v21 }
  0x8d   :  { %192 = vtanh.f32 %v91_v26  ;;  %v122_v31 = vmul.f32 %v189_v28, %v109_v29 }
  0x8f   :  { %v125_v35 = vadd.f32 %v122_v31, %v121_v30 }
  0x92   :  { %v191_v32 = vpop.eup %190 }
  0x93   :  { %v193_v34 = vpop.eup %192  ;;  %v123_v36 = vmul.f32 %v191_v32, %v114_v33 }
  0x94   :  { %v124_v39 = vmul.f32 %v193_v34, %v119_v37 }
  0x95   :  { %v126_v38 = vadd.f32 %v125_v35, %v123_v36 }
  0x97   :  { %v127_v40 = vadd.f32 %v126_v38, %v124_v39 }
  0x99   :  { %v128_v41 = vrot.slane %v127_v40, 4 }
  0x9b   :  { %v129_v42 = vadd.f32 %v128_v41, %v127_v40 }
  0x9d   :  { %v130_v43 = vrot.slane %v129_v42, 2 }
  0x9f   :  { %v131_v44 = vadd.f32 %v130_v43, %v129_v42 }
  0xa1   :  { %v132_v45 = vrot.slane %v131_v44, 1 }
  0xa3   :  { %v133_v47 = vadd.f32 %v132_v45, %v131_v44 }
  0xa5   :  { %v136_v48 = vadd.f32 %v135_v46, %v133_v47 }
  0xa7   :  { %v177_v49 = vmul.f32 -1.442695, %v136_v48 }
  0xa9   :  { %194 = vpow2.f32 %v177_v49 }
  0xaf   :  { %v195_v50 = vpop.eup %194 }
  0xb0   :  { %v140_v51 = vadd.f32 1.0, %v195_v50 }
  0xb2   :  { %196 = vrcp.f32 %v140_v51  ;;  %v152_v55 = vand.u32 2147483648, %v140_v51  ;;  %v150_v57 = vand.u32 2147483647, %v140_v51  ;;  %vm146_vm2 = vweird.f32 %v140_v51 }
  0xb4   :  { %v153_v59 = vor.u32 1.1754944e-38, %v152_v55  ;;  %vm151_vm4 = vcmp.eq.f32.partialorder %v150_v57, 8.507059e+37 }
  0xb8   :  { %v197_v52 = vpop.eup %196 }
  0xb9   :  { %v142_v53 = vmul.f32 %v197_v52, %v140_v51  ;;  %vm147_vm1 = vweird.f32 %v197_v52 }
  0xba   :  { %vm148_vm3 = vmor %vm146_vm2, %vm147_vm1 }
  0xbb   :  { %v143_v54 = vsub.f32 1.0, %v142_v53 }
  0xbd   :  { %v144_v56 = vmul.f32 %v197_v52, %v143_v54 }
  0xbf   :  { %v145_v58 = vadd.f32 %v197_v52, %v144_v56 }
  0xc1   :  { %v149_v60 = vsel %vm148_vm3, %v197_v52, %v145_v58 }
  0xc2   :  { %v154_v61 = vsel %vm151_vm4, %v153_v59, %v149_v60 }
  0xc3   :  { %156 = vst [vmem:[#allocation3] sm:$0x1] %v154_v61 }
  0xc4   :  { %167 = dma.vmem_to_hbm [thread:$0]  %s163_s18, 16, %s165_s4, [#allocation4]  }
  0xc5   :  { %222 = dma.done.wait [#allocation4], 16  }
  0xc6   :  { %223 = vsyncadd [#allocation4], 4294967280 }
  0xc7   :  { %172 = vsyncpa [#allocation4], 1 }

</bundles_post_ra>
